<compile_context>
chip_gen: v7x
topology: tpu7x:2x2x1
jax: 0.10.0
libtpu: 0.0.40
codegen_flags: <defaults>
</compile_context>

<pallas_src>
import functools

import jax
import jax.numpy as jnp
from jax.experimental import pallas as pl
from jax.experimental.pallas import tpu as pltpu


def _rotate_half(t, dh):
    # rotate_half(t) = cat((-t2, t1)) on the per-head (last) axis.
    # slice+concat instead of pltpu.roll: the per-head width (Dh lanes) is far
    # below a full 128-lane vreg, and both forms land in the XLU slot anyway.
    return jnp.concatenate([-t[:, dh // 2:], t[:, :dh // 2]], axis=-1)


# ----------------------------------------------------------------------------
# Fused kernel: per batch element, everything stays in VMEM.
# ----------------------------------------------------------------------------
def _fused_attention_kernel(x_ref, w_ref, cosq_ref, sinq_ref, cosk_ref,
                            sink_ref, wo_ref, bo_ref, o_ref, *, heads,
                            dim_head):
    inner = heads * dim_head
    dh = dim_head

    # --- fused QKV projection: one bf16 MXU matmul, f32 accumulation ---------
    x = x_ref[0].astype(jnp.bfloat16)                         # (N, dim)
    proj = jnp.dot(x, w_ref[...],                             # (N, 3*inner) f32
                   preferred_element_type=jnp.float32)

    cos_q = cosq_ref[...]                                     # (N, Dh), scaled
    sin_q = sinq_ref[...]                                     # (N, Dh), scaled
    cos_k = cosk_ref[...]                                     # (N, Dh)
    sin_k = sink_ref[...]                                     # (N, Dh)

    n = proj.shape[0]
    dim_out = wo_ref.shape[1]
    acc = jnp.zeros((n, dim_out), jnp.float32)                # f32 accumulator

    for h in range(heads):                                    # unrolled at trace
        qh = proj[:, h * dh:(h + 1) * dh]
        kh = proj[:, inner + h * dh: inner + (h + 1) * dh]
        vh = proj[:, 2 * inner + h * dh: 2 * inner + (h + 1) * dh]

        # rotary pos emb epilogue (softmax scale folded into the q tables)
        qh = (qh * cos_q + _rotate_half(qh, dh) * sin_q).astype(jnp.bfloat16)
        kh = (kh * cos_k + _rotate_half(kh, dh) * sin_k).astype(jnp.bfloat16)
        vh = vh.astype(jnp.bfloat16)

        # scores q @ k^T  (N, N), f32 accumulation
        s = jax.lax.dot_general(qh, kh, (((1,), (1,)), ((), ())),
                                preferred_element_type=jnp.float32)
        s = s - jnp.max(s, axis=-1, keepdims=True)
        p = jnp.exp(s)
        denom = jnp.sum(p, axis=-1, keepdims=True)            # (N, 1)

        # PV matmul first, then normalize on (N, Dh) instead of (N, N)
        o_h = jnp.dot(p.astype(jnp.bfloat16), vh,
                      preferred_element_type=jnp.float32)     # (N, Dh)
        o_h = o_h * pl.reciprocal(denom, approx=True)

        # output projection folded into the head loop (static Ref row slice)
        acc = acc + jnp.dot(o_h.astype(jnp.bfloat16),
                            wo_ref[h * dh:(h + 1) * dh, :],
                            preferred_element_type=jnp.float32)

    o_ref[0] = (acc + bo_ref[...]).astype(o_ref.dtype)


# ----------------------------------------------------------------------------
# Wrapper: weight / table preparation (trace-time JAX glue) + pallas_call.
# ----------------------------------------------------------------------------
def attention_forward(x, params, rotary_emb):
    """x: (B, N, dim); rotary_emb: (N, dim_head) -> (B, N, dim)."""
    B, N, dim = x.shape
    H = params["heads"]
    Dh = params["dim_head"]
    inner = H * Dh
    scale = Dh ** -0.5

    # Fused (dim, 3*inner) projection weight: [Wq | Wk | Wv] columns.
    w_big = jnp.concatenate([params["wq"], params["wkv"]],
                            axis=1).astype(jnp.bfloat16)
    wo = params["wo"].astype(jnp.bfloat16)                    # (inner, dim)
    bo = params["bo"].astype(jnp.float32)                     # (1, dim)

    # (N, Dh) cos/sin tables; softmax scale baked into the q pair.
    cos = jnp.cos(rotary_emb).astype(jnp.float32)
    sin = jnp.sin(rotary_emb).astype(jnp.float32)
    cos_q, sin_q = cos * scale, sin * scale

    kernel = functools.partial(_fused_attention_kernel, heads=H, dim_head=Dh)
    shared = lambda b: (0, 0)

    flops = B * (2 * N * dim * 3 * inner          # fused QKV projection
                 + 4 * H * N * N * Dh             # QK^T + PV
                 + 2 * N * inner * dim)           # output projection
    transcendentals = B * H * N * N               # exp
    bytes_accessed = (8 * B * N * dim                           # x in + out (f32)
                      + B * (2 * dim * 3 * inner                # bf16 fused W
                             + 2 * inner * dim + 4 * dim        # bf16 Wo + f32 bo
                             + 4 * 4 * N * Dh))                 # 4 f32 rope tables

    return pl.pallas_call(
        kernel,
        out_shape=jax.ShapeDtypeStruct((B, N, dim), x.dtype),
        grid=(B,),
        in_specs=[
            pl.BlockSpec((1, N, dim), lambda b: (b, 0, 0)),     # x
            pl.BlockSpec((dim, 3 * inner), shared),             # fused [Wq|Wk|Wv]
            pl.BlockSpec((N, Dh), shared),                      # cos_q (scaled)
            pl.BlockSpec((N, Dh), shared),                      # sin_q (scaled)
            pl.BlockSpec((N, Dh), shared),                      # cos_k
            pl.BlockSpec((N, Dh), shared),                      # sin_k
            pl.BlockSpec((inner, dim), shared),                 # W_out
            pl.BlockSpec((1, dim), shared),                     # b_out
        ],
        out_specs=pl.BlockSpec((1, N, dim), lambda b: (b, 0, 0)),
        compiler_params=pltpu.CompilerParams(
            dimension_semantics=("parallel",),
            vmem_limit_bytes=32 * 1024 * 1024),
        cost_estimate=pl.CostEstimate(
            flops=flops, transcendentals=transcendentals,
            bytes_accessed=bytes_accessed),
    )(x, w_big, cos_q, sin_q, cos, sin, wo, bo)


# ----------------------------------------------------------------------------
# Pure-JAX f32 reference (matches the PyTorch module semantics).
# ----------------------------------------------------------------------------
def reference_forward(x, params, rotary_emb):
    B, N, dim = x.shape
    H, Dh = params["heads"], params["dim_head"]
    inner = H * Dh
    scale = Dh ** -0.5

    q = x @ params["wq"]
    kv = x @ params["wkv"]
    k, v = kv[..., :inner], kv[..., inner:]

    def to_heads(t):
        return t.reshape(B, N, H, Dh).transpose(0, 2, 1, 3)

    q, k, v = map(to_heads, (q, k, v))

    def rope(t):
        t1, t2 = jnp.split(t, 2, axis=-1)
        rot = jnp.concatenate([-t2, t1], axis=-1)
        return t * jnp.cos(rotary_emb) + rot * jnp.sin(rotary_emb)

    q, k = rope(q), rope(k)
    s = jnp.einsum("bhid,bhjd->bhij", q, k) * scale
    p = jax.nn.softmax(s, axis=-1)
    o = jnp.einsum("bhij,bhjd->bhid", p, v)
    o = o.transpose(0, 2, 1, 3).reshape(B, N, inner)
    return o @ params["wo"] + params["bo"][0]


if __name__ == "__main__":
    # Small shapes consistent with the module.
    B, N, dim = 2, 8, 32
    heads, dim_head = 2, 16
    inner = heads * dim_head

    key = jax.random.PRNGKey(0)
    k1, k2, k3, k4, k5 = jax.random.split(key, 5)

    params = {
        "heads": heads,
        "dim_head": dim_head,
        # weights stored as (in, out) so the forward is x @ W
        "wq": jax.random.normal(k1, (dim, inner), jnp.float32) * 0.1,
        "wkv": jax.random.normal(k2, (dim, 2 * inner), jnp.float32) * 0.1,
        "wo": jax.random.normal(k3, (inner, dim), jnp.float32) * 0.1,
        "bo": jax.random.normal(k4, (1, dim), jnp.float32) * 0.1,
    }

    x = jax.random.normal(k5, (B, N, dim), jnp.float32)

    # RotaryEmbedding(dim_head)(N): freqs = cat((t . inv_freq, t . inv_freq))
    inv_freq = 1.0 / (10000.0 ** (jnp.arange(0, dim_head, 2,
                                             dtype=jnp.float32) / dim_head))
    t = jnp.arange(N, dtype=jnp.float32)
    freqs = jnp.einsum("i,j->ij", t, inv_freq)
    rotary_emb = jnp.concatenate([freqs, freqs], axis=-1)   # (N, dim_head)

    out = attention_forward(x, params, rotary_emb)
    out = jax.block_until_ready(out)

    ref = reference_forward(x, params, rotary_emb)
    assert out.shape == (B, N, dim)
    # Tolerance loosened: bf16 MXU operands + approx reciprocal vs f32 ref.
    err = jnp.max(jnp.abs(out - ref))
    assert jnp.allclose(out, ref, atol=3e-2, rtol=3e-2), f"max err {err}"
    print("KERNEL_OK")
</pallas_src>

<mosaic_0001>
module attributes {stable_mosaic.version = 11 : i64} {
  func.func @_fused_attention_kernel(%arg0: i32, %arg1: memref<1x8x32xf32, #tpu.memory_space<vmem>>, %arg2: memref<32x96xbf16, #tpu.memory_space<vmem>>, %arg3: memref<8x16xf32, #tpu.memory_space<vmem>>, %arg4: memref<8x16xf32, #tpu.memory_space<vmem>>, %arg5: memref<8x16xf32, #tpu.memory_space<vmem>>, %arg6: memref<8x16xf32, #tpu.memory_space<vmem>>, %arg7: memref<32x32xbf16, #tpu.memory_space<vmem>>, %arg8: memref<1x32xf32, #tpu.memory_space<vmem>>, %arg9: memref<1x8x32xf32, #tpu.memory_space<vmem>>) attributes {dimension_semantics = [#tpu.dimension_semantics<parallel>], iteration_bounds = array<i64: 2>, scalar_prefetch = 0 : i64, scratch_operands = 0 : i64, tpu.core_type = #tpu.core_type<tc>, window_params = [{transform_indices = @transform_0, window_bounds = array<i64: 1, 8, 32>}, {pipeline_mode = #tpu.pipeline_mode<synchronous>, transform_indices = @transform_1, window_bounds = array<i64: 32, 96>}, {pipeline_mode = #tpu.pipeline_mode<synchronous>, transform_indices = @transform_2, window_bounds = array<i64: 8, 16>}, {pipeline_mode = #tpu.pipeline_mode<synchronous>, transform_indices = @transform_3, window_bounds = array<i64: 8, 16>}, {pipeline_mode = #tpu.pipeline_mode<synchronous>, transform_indices = @transform_4, window_bounds = array<i64: 8, 16>}, {pipeline_mode = #tpu.pipeline_mode<synchronous>, transform_indices = @transform_5, window_bounds = array<i64: 8, 16>}, {pipeline_mode = #tpu.pipeline_mode<synchronous>, transform_indices = @transform_6, window_bounds = array<i64: 32, 32>}, {pipeline_mode = #tpu.pipeline_mode<synchronous>, transform_indices = @transform_7, window_bounds = array<i64: 1, 32>}, {transform_indices = @transform_8, window_bounds = array<i64: 1, 8, 32>}]} {
    %c0 = arith.constant 0 : index
    %c0_0 = arith.constant 0 : index
    %c0_1 = arith.constant 0 : index
    %0 = vector.load %arg1[%c0, %c0_0, %c0_1] : memref<1x8x32xf32, #tpu.memory_space<vmem>>, vector<1x8x32xf32>
    %1 = vector.shape_cast %0 : vector<1x8x32xf32> to vector<8x32xf32>
    %2 = arith.truncf %1 : vector<8x32xf32> to vector<8x32xbf16>
    %c0_2 = arith.constant 0 : index
    %c0_3 = arith.constant 0 : index
    %3 = vector.load %arg2[%c0_2, %c0_3] : memref<32x96xbf16, #tpu.memory_space<vmem>>, vector<32x96xbf16>
    %cst = arith.constant dense<0.000000e+00> : vector<8x96xf32>
    %4 = tpu.matmul %2, %3, %cst {dimension_numbers = #tpu.dot_dimension_numbers<[1], [0], [0], [1], [0, 0, 1, 1], [], []>} : vector<8x32xbf16>, vector<32x96xbf16>, vector<8x96xf32> -> vector<8x96xf32>
    %c0_4 = arith.constant 0 : index
    %c0_5 = arith.constant 0 : index
    %5 = vector.load %arg3[%c0_4, %c0_5] : memref<8x16xf32, #tpu.memory_space<vmem>>, vector<8x16xf32>
    %c0_6 = arith.constant 0 : index
    %c0_7 = arith.constant 0 : index
    %6 = vector.load %arg4[%c0_6, %c0_7] : memref<8x16xf32, #tpu.memory_space<vmem>>, vector<8x16xf32>
    %c0_8 = arith.constant 0 : index
    %c0_9 = arith.constant 0 : index
    %7 = vector.load %arg5[%c0_8, %c0_9] : memref<8x16xf32, #tpu.memory_space<vmem>>, vector<8x16xf32>
    %c0_10 = arith.constant 0 : index
    %c0_11 = arith.constant 0 : index
    %8 = vector.load %arg6[%c0_10, %c0_11] : memref<8x16xf32, #tpu.memory_space<vmem>>, vector<8x16xf32>
    %cst_12 = arith.constant 0.000000e+00 : f32
    %9 = vector.broadcast %cst_12 : f32 to vector<8x32xf32>
    %10 = vector.extract_strided_slice %4 {offsets = [0, 0], sizes = [8, 16], strides = [1, 1]} : vector<8x96xf32> to vector<8x16xf32>
    %11 = vector.extract_strided_slice %4 {offsets = [0, 32], sizes = [8, 16], strides = [1, 1]} : vector<8x96xf32> to vector<8x16xf32>
    %12 = vector.extract_strided_slice %4 {offsets = [0, 64], sizes = [8, 16], strides = [1, 1]} : vector<8x96xf32> to vector<8x16xf32>
    %13 = arith.mulf %10, %5 : vector<8x16xf32>
    %14 = vector.extract_strided_slice %10 {offsets = [0, 8], sizes = [8, 8], strides = [1, 1]} : vector<8x16xf32> to vector<8x8xf32>
    %cst_13 = arith.constant 0.000000e+00 : f32
    %15 = vector.broadcast %cst_13 : f32 to vector<8x8xf32>
    %16 = arith.subf %15, %14 : vector<8x8xf32>
    %17 = vector.extract_strided_slice %10 {offsets = [0, 0], sizes = [8, 8], strides = [1, 1]} : vector<8x16xf32> to vector<8x8xf32>
    %18 = tpu.concatenate %16, %17 in 1 : vector<8x8xf32>, vector<8x8xf32> -> vector<8x16xf32>
    %19 = arith.mulf %18, %6 : vector<8x16xf32>
    %20 = arith.addf %13, %19 : vector<8x16xf32>
    %21 = arith.truncf %20 : vector<8x16xf32> to vector<8x16xbf16>
    %22 = arith.mulf %11, %7 : vector<8x16xf32>
    %23 = vector.extract_strided_slice %11 {offsets = [0, 8], sizes = [8, 8], strides = [1, 1]} : vector<8x16xf32> to vector<8x8xf32>
    %cst_14 = arith.constant 0.000000e+00 : f32
    %24 = vector.broadcast %cst_14 : f32 to vector<8x8xf32>
    %25 = arith.subf %24, %23 : vector<8x8xf32>
    %26 = vector.extract_strided_slice %11 {offsets = [0, 0], sizes = [8, 8], strides = [1, 1]} : vector<8x16xf32> to vector<8x8xf32>
    %27 = tpu.concatenate %25, %26 in 1 : vector<8x8xf32>, vector<8x8xf32> -> vector<8x16xf32>
    %28 = arith.mulf %27, %8 : vector<8x16xf32>
    %29 = arith.addf %22, %28 : vector<8x16xf32>
    %30 = arith.truncf %29 : vector<8x16xf32> to vector<8x16xbf16>
    %31 = arith.truncf %12 : vector<8x16xf32> to vector<8x16xbf16>
    %cst_15 = arith.constant dense<0.000000e+00> : vector<8x8xf32>
    %32 = tpu.matmul %21, %30, %cst_15 {dimension_numbers = #tpu.dot_dimension_numbers<[1], [1], [0], [0], [0, 0, 1, 0], [], []>} : vector<8x16xbf16>, vector<8x16xbf16>, vector<8x8xf32> -> vector<8x8xf32>
    %cst_16 = arith.constant dense<0xFF800000> : vector<8xf32>
    %33 = vector.multi_reduction <maximumf>, %32, %cst_16 [1] : vector<8x8xf32> to vector<8xf32>
    %34 = vector.shape_cast %33 : vector<8xf32> to vector<8x1xf32>
    %35 = vector.broadcast %34 : vector<8x1xf32> to vector<8x8xf32>
    %36 = arith.subf %32, %35 : vector<8x8xf32>
    %37 = math.exp %36 : vector<8x8xf32>
    %cst_17 = arith.constant dense<0.000000e+00> : vector<8xf32>
    %38 = vector.multi_reduction <add>, %37, %cst_17 [1] : vector<8x8xf32> to vector<8xf32>
    %39 = vector.shape_cast %38 : vector<8xf32> to vector<8x1xf32>
    %40 = arith.truncf %37 : vector<8x8xf32> to vector<8x8xbf16>
    %cst_18 = arith.constant dense<0.000000e+00> : vector<8x16xf32>
    %41 = tpu.matmul %40, %31, %cst_18 {dimension_numbers = #tpu.dot_dimension_numbers<[1], [0], [0], [1], [0, 0, 1, 1], [], []>} : vector<8x8xbf16>, vector<8x16xbf16>, vector<8x16xf32> -> vector<8x16xf32>
    %42 = tpu.reciprocal %39 {approx = true} : vector<8x1xf32> -> vector<8x1xf32>
    %43 = vector.broadcast %42 : vector<8x1xf32> to vector<8x16xf32>
    %44 = arith.mulf %41, %43 : vector<8x16xf32>
    %45 = arith.truncf %44 : vector<8x16xf32> to vector<8x16xbf16>
    %c0_19 = arith.constant 0 : index
    %c0_20 = arith.constant 0 : index
    %46 = vector.load %arg7[%c0_19, %c0_20] : memref<32x32xbf16, #tpu.memory_space<vmem>>, vector<16x32xbf16>
    %cst_21 = arith.constant dense<0.000000e+00> : vector<8x32xf32>
    %47 = tpu.matmul %45, %46, %cst_21 {dimension_numbers = #tpu.dot_dimension_numbers<[1], [0], [0], [1], [0, 0, 1, 1], [], []>} : vector<8x16xbf16>, vector<16x32xbf16>, vector<8x32xf32> -> vector<8x32xf32>
    %48 = arith.addf %9, %47 : vector<8x32xf32>
    %49 = vector.extract_strided_slice %4 {offsets = [0, 16], sizes = [8, 16], strides = [1, 1]} : vector<8x96xf32> to vector<8x16xf32>
    %50 = vector.extract_strided_slice %4 {offsets = [0, 48], sizes = [8, 16], strides = [1, 1]} : vector<8x96xf32> to vector<8x16xf32>
    %51 = vector.extract_strided_slice %4 {offsets = [0, 80], sizes = [8, 16], strides = [1, 1]} : vector<8x96xf32> to vector<8x16xf32>
    %52 = arith.mulf %49, %5 : vector<8x16xf32>
    %53 = vector.extract_strided_slice %49 {offsets = [0, 8], sizes = [8, 8], strides = [1, 1]} : vector<8x16xf32> to vector<8x8xf32>
    %cst_22 = arith.constant 0.000000e+00 : f32
    %54 = vector.broadcast %cst_22 : f32 to vector<8x8xf32>
    %55 = arith.subf %54, %53 : vector<8x8xf32>
    %56 = vector.extract_strided_slice %49 {offsets = [0, 0], sizes = [8, 8], strides = [1, 1]} : vector<8x16xf32> to vector<8x8xf32>
    %57 = tpu.concatenate %55, %56 in 1 : vector<8x8xf32>, vector<8x8xf32> -> vector<8x16xf32>
    %58 = arith.mulf %57, %6 : vector<8x16xf32>
    %59 = arith.addf %52, %58 : vector<8x16xf32>
    %60 = arith.truncf %59 : vector<8x16xf32> to vector<8x16xbf16>
    %61 = arith.mulf %50, %7 : vector<8x16xf32>
    %62 = vector.extract_strided_slice %50 {offsets = [0, 8], sizes = [8, 8], strides = [1, 1]} : vector<8x16xf32> to vector<8x8xf32>
    %cst_23 = arith.constant 0.000000e+00 : f32
    %63 = vector.broadcast %cst_23 : f32 to vector<8x8xf32>
    %64 = arith.subf %63, %62 : vector<8x8xf32>
    %65 = vector.extract_strided_slice %50 {offsets = [0, 0], sizes = [8, 8], strides = [1, 1]} : vector<8x16xf32> to vector<8x8xf32>
    %66 = tpu.concatenate %64, %65 in 1 : vector<8x8xf32>, vector<8x8xf32> -> vector<8x16xf32>
    %67 = arith.mulf %66, %8 : vector<8x16xf32>
    %68 = arith.addf %61, %67 : vector<8x16xf32>
    %69 = arith.truncf %68 : vector<8x16xf32> to vector<8x16xbf16>
    %70 = arith.truncf %51 : vector<8x16xf32> to vector<8x16xbf16>
    %cst_24 = arith.constant dense<0.000000e+00> : vector<8x8xf32>
    %71 = tpu.matmul %60, %69, %cst_24 {dimension_numbers = #tpu.dot_dimension_numbers<[1], [1], [0], [0], [0, 0, 1, 0], [], []>} : vector<8x16xbf16>, vector<8x16xbf16>, vector<8x8xf32> -> vector<8x8xf32>
    %cst_25 = arith.constant dense<0xFF800000> : vector<8xf32>
    %72 = vector.multi_reduction <maximumf>, %71, %cst_25 [1] : vector<8x8xf32> to vector<8xf32>
    %73 = vector.shape_cast %72 : vector<8xf32> to vector<8x1xf32>
    %74 = vector.broadcast %73 : vector<8x1xf32> to vector<8x8xf32>
    %75 = arith.subf %71, %74 : vector<8x8xf32>
    %76 = math.exp %75 : vector<8x8xf32>
    %cst_26 = arith.constant dense<0.000000e+00> : vector<8xf32>
    %77 = vector.multi_reduction <add>, %76, %cst_26 [1] : vector<8x8xf32> to vector<8xf32>
    %78 = vector.shape_cast %77 : vector<8xf32> to vector<8x1xf32>
    %79 = arith.truncf %76 : vector<8x8xf32> to vector<8x8xbf16>
    %cst_27 = arith.constant dense<0.000000e+00> : vector<8x16xf32>
    %80 = tpu.matmul %79, %70, %cst_27 {dimension_numbers = #tpu.dot_dimension_numbers<[1], [0], [0], [1], [0, 0, 1, 1], [], []>} : vector<8x8xbf16>, vector<8x16xbf16>, vector<8x16xf32> -> vector<8x16xf32>
    %81 = tpu.reciprocal %78 {approx = true} : vector<8x1xf32> -> vector<8x1xf32>
    %82 = vector.broadcast %81 : vector<8x1xf32> to vector<8x16xf32>
    %83 = arith.mulf %80, %82 : vector<8x16xf32>
    %84 = arith.truncf %83 : vector<8x16xf32> to vector<8x16xbf16>
    %c16 = arith.constant 16 : index
    %c0_28 = arith.constant 0 : index
    %85 = vector.load %arg7[%c16, %c0_28] : memref<32x32xbf16, #tpu.memory_space<vmem>>, vector<16x32xbf16>
    %cst_29 = arith.constant dense<0.000000e+00> : vector<8x32xf32>
    %86 = tpu.matmul %84, %85, %cst_29 {dimension_numbers = #tpu.dot_dimension_numbers<[1], [0], [0], [1], [0, 0, 1, 1], [], []>} : vector<8x16xbf16>, vector<16x32xbf16>, vector<8x32xf32> -> vector<8x32xf32>
    %87 = arith.addf %48, %86 : vector<8x32xf32>
    %c0_30 = arith.constant 0 : index
    %c0_31 = arith.constant 0 : index
    %88 = vector.load %arg8[%c0_30, %c0_31] : memref<1x32xf32, #tpu.memory_space<vmem>>, vector<1x32xf32>
    %89 = vector.broadcast %88 : vector<1x32xf32> to vector<8x32xf32>
    %90 = arith.addf %87, %89 : vector<8x32xf32>
    %c0_32 = arith.constant 0 : index
    %c0_33 = arith.constant 0 : index
    %c0_34 = arith.constant 0 : index
    %91 = vector.load %arg9[%c0_32, %c0_33, %c0_34] : memref<1x8x32xf32, #tpu.memory_space<vmem>>, vector<1x8x32xf32>
    %92 = vector.shape_cast %91 : vector<1x8x32xf32> to vector<8x32xf32>
    %93 = vector.shape_cast %90 : vector<8x32xf32> to vector<1x8x32xf32>
    tpu.vector_store %arg9[%c0_32, %c0_33, %c0_34], %93 {strides = array<i32>} : memref<1x8x32xf32, #tpu.memory_space<vmem>>, vector<1x8x32xf32>,
    return
  }
  func.func @transform_0(%arg0: i32) -> (i32, i32, i32) {
    %c0_i32 = arith.constant 0 : i32
    %c0_i32_0 = arith.constant 0 : i32
    %c0_i32_1 = arith.constant 0 : i32
    return %arg0, %c0_i32, %c0_i32_0 : i32, i32, i32
  }
  func.func @transform_1(%arg0: i32) -> (i32, i32) {
    %c0_i32 = arith.constant 0 : i32
    %c0_i32_0 = arith.constant 0 : i32
    %c0_i32_1 = arith.constant 0 : i32
    return %c0_i32, %c0_i32_0 : i32, i32
  }
  func.func @transform_2(%arg0: i32) -> (i32, i32) {
    %c0_i32 = arith.constant 0 : i32
    %c0_i32_0 = arith.constant 0 : i32
    %c0_i32_1 = arith.constant 0 : i32
    return %c0_i32, %c0_i32_0 : i32, i32
  }
  func.func @transform_3(%arg0: i32) -> (i32, i32) {
    %c0_i32 = arith.constant 0 : i32
    %c0_i32_0 = arith.constant 0 : i32
    %c0_i32_1 = arith.constant 0 : i32
    return %c0_i32, %c0_i32_0 : i32, i32
  }
  func.func @transform_4(%arg0: i32) -> (i32, i32) {
    %c0_i32 = arith.constant 0 : i32
    %c0_i32_0 = arith.constant 0 : i32
    %c0_i32_1 = arith.constant 0 : i32
    return %c0_i32, %c0_i32_0 : i32, i32
  }
  func.func @transform_5(%arg0: i32) -> (i32, i32) {
    %c0_i32 = arith.constant 0 : i32
    %c0_i32_0 = arith.constant 0 : i32
    %c0_i32_1 = arith.constant 0 : i32
    return %c0_i32, %c0_i32_0 : i32, i32
  }
  func.func @transform_6(%arg0: i32) -> (i32, i32) {
    %c0_i32 = arith.constant 0 : i32
    %c0_i32_0 = arith.constant 0 : i32
    %c0_i32_1 = arith.constant 0 : i32
    return %c0_i32, %c0_i32_0 : i32, i32
  }
  func.func @transform_7(%arg0: i32) -> (i32, i32) {
    %c0_i32 = arith.constant 0 : i32
    %c0_i32_0 = arith.constant 0 : i32
    %c0_i32_1 = arith.constant 0 : i32
    return %c0_i32, %c0_i32_0 : i32, i32
  }
  func.func @transform_8(%arg0: i32) -> (i32, i32, i32) {
    %c0_i32 = arith.constant 0 : i32
    %c0_i32_0 = arith.constant 0 : i32
    %c0_i32_1 = arith.constant 0 : i32
    return %arg0, %c0_i32, %c0_i32_0 : i32, i32, i32
  }
}

</mosaic_0001>

<bundles_post_ra>
// kernel: tpu_custom_call.1
= control target key start
LH: loop header
LB: loop body
LE: loop exit
PB: predicated region body
PF: predicated region fallthrough
CT: control target
= control target key end

     0   :  { %13 = vsyncpa [#allocation3], 0  ;;  %s1898_s0 = inlined_call_operand.hbm [shape: f32[2,8,32], index: 0, kind: input, shape index: {}]   ;;  %s1899_s1 = inlined_call_operand.hbm [shape: bf16[32,96], index: 1, kind: input, shape index: {}]   ;;  %s1900_s2 = inlined_call_operand.hbm [shape: f32[8,16], index: 2, kind: input, shape index: {}]   ;;  %s1901_s3 = inlined_call_operand.hbm [shape: f32[8,16], index: 3, kind: input, shape index: {}]   ;;  %s1902_s4 = inlined_call_operand.hbm [shape: f32[8,16], index: 4, kind: input, shape index: {}]   ;;  %s1903_s5 = inlined_call_operand.hbm [shape: f32[8,16], index: 5, kind: input, shape index: {}]   ;;  %s1904_s6 = inlined_call_operand.vmem [shape: bf16[32,32], index: 6, kind: input, shape index: {}]   ;;  %s1905_s7 = inlined_call_operand.vmem [shape: f32[1,32], index: 7, kind: input, shape index: {}]   ;;  %s1906_s8 = inlined_call_operand.hbm [shape: f32[2,8,32], index: 8, kind: output, shape index: {}]  }
   0x1   :  { %15 = vsyncpa [#allocation3 + $0x1], 0 }
   0x2   :  { %16 = vsyncpa [#allocation6], 0 }
   0x3   :  { %17 = vsyncpa [#allocation9], 0 }
   0x4   :  { %18 = vsyncpa [#allocation12], 0 }
   0x5   :  { %19 = vsyncpa [#allocation4], 0 }
   0x6   :  { %21 = vsyncpa [#allocation4 + $0x1], 0  ;;  %s1530_s27 = smov 0   ;;  %s1532_s28 = smov 0  }
   0x7   :  { %s1534_s29 = smov 0   ;;  %s1536_s30 = smov 0  }
   0x8 LB: > { %s1462_s9 = smov [#allocation5]   ;;  %s1551_s11 = sadd.s32 4294967295, %s1460_s30   ;;  %s1460_s30 = sphi %s1536_s30, %s1931_s30   ;;  %s1456_s29 = sphi %s1534_s29, %s1930_s29   ;;  %s1452_s28 = sphi %s1532_s28, %s1929_s28   ;;  %s1448_s27 = sphi %s1530_s27, %s1928_s27  }
   0x9   : > { %s243_s10 = sshll.u32 %s1462_s9, 4  ;;  %p995_p0 = scmp.ge.s32.totalorder %s1460_s30, 1  ;;  %s1556_s10 = int_to_ptr.vmem [resolvable:$true] %s243_s10 }
   0xa   : > { %p1907_p1 = scmp.eq.s32.totalorder %s1551_s11, 0  ;;  %p231_p2 = scmp.lt.s32.totalorder %s1460_s30, 3 }
   0xb   : > { %s1463_s13 = smov [#allocation8]   ;;  %s1464_s16 = smov [#allocation7]  }
   0xc   : > { %p1558_p3 = pnand %p995_p0, %p231_p2  ;;  %s268_s14 = sshll.u32 %s1463_s13, 4  ;;  %s1571_s14 = int_to_ptr.vmem [resolvable:$true] %s268_s14 }
   0xd   : > { %s257_s17 = sshll.u32 %s1464_s16, 4  ;;  %s1212_s20 = scalar_lea.hbm %s1899_s1, 256  ;;  %s1573_s17 = int_to_ptr.vmem [resolvable:$true] %s257_s17 }
   0xe   : > { %s1910_s12 = scalar_select %p1558_p3, 1, 0 }
   0xf   : > { %p1111_p5 = pneg %p1558_p3  ;;  %p1213_p7 = scmp.ne.s32.totalorder %s1899_s1, %s1212_s20 }
  0x10   : > { %p1219_p11 = scmp.lt.u32.totalorder %s1212_s20, %s1899_s1 }
  0x11   : > { %p1567_p6 = pnand %p1111_p5, %p1907_p1 }
  0x13   : > { %p1583_p8 = pneg %p1567_p6 }
  0x15   : > { %p1215_p9 = pnand %p1583_p8, %p1213_p7 }
  0x17   : > { %p1216_p10 = pneg %p1215_p9 }
  0x19   : > { %p1221_p12 = pnand %p1219_p11, %p1216_p10 }
  0x1b   : > { %1224 = shalt.err (!%p1221_p12)
}
  0x1c   : > { %s1225_s26 = scalar_lea.vmem %s1556_s10, 256  ;;  %p1233_p5 = scmp.lt.s32.totalorder %s1556_s10, %s1556_s10 }
  0x1d   : > { %p1226_p13 = scmp.ne.s32.totalorder %s1556_s10, %s1225_s26  ;;  %p1234_p4 = scmp.lt.s32.totalorder %s1225_s26, %s1225_s26 }
  0x1f   : > { %p1228_p0 = pnand %p1226_p13, %p1583_p8  ;;  %p1235_p7 = por %p1234_p4, %p1233_p5 }
  0x21   : > { %p1229_p2 = pneg %p1228_p0 }
  0x23   : > { %p1236_p9 = pnand %p1235_p7, %p1229_p2 }
  0x25   : > { %1239 = shalt.err (!%p1236_p9)
}
  0x26   : > { %s1465_s9 = smov 64   ;;  %s1466_s13 = smov 4  }
  0x27   : > { %1114 = dma.hbm_to_vmem [thread:$0]  (!%p1567_p6), %s1899_s1, 256, %s1556_s10, [#allocation6], %s1465_s9, %s1465_s9, %s1466_s13  }
  0x28   : > { %s1240_s21 = scalar_lea.hbm %s1901_s3, 128 }
  0x29   : > { %p1241_p4 = scmp.ne.s32.totalorder %s1901_s3, %s1240_s21  ;;  %p1247_p12 = scmp.lt.u32.totalorder %s1240_s21, %s1901_s3 }
  0x2b   : > { %p1243_p10 = pnand %p1241_p4, %p1583_p8 }
  0x2d   : > { %p1244_p11 = pneg %p1243_p10 }
  0x2f   : > { %p1249_p13 = pnand %p1247_p12, %p1244_p11 }
  0x31   : > { %1252 = shalt.err (!%p1249_p13)
}
  0x32   : > { %s1253_s10 = scalar_lea.vmem %s1571_s14, 128  ;;  %p1261_p7 = scmp.lt.s32.totalorder %s1571_s14, %s1571_s14 }
  0x33   : > { %p1254_p0 = scmp.ne.s32.totalorder %s1571_s14, %s1253_s10  ;;  %p1262_p9 = scmp.lt.s32.totalorder %s1253_s10, %s1253_s10 }
  0x35   : > { %p1256_p2 = pnand %p1254_p0, %p1583_p8  ;;  %p1263_p4 = por %p1262_p9, %p1261_p7 }
  0x37   : > { %p1257_p5 = pneg %p1256_p2 }
  0x39   : > { %p1264_p10 = pnand %p1263_p4, %p1257_p5 }
  0x3b   : > { %1267 = shalt.err (!%p1264_p10)
}
  0x3c   : > { %1120 = dma.hbm_to_vmem [thread:$0]  (!%p1567_p6), %s1901_s3, 128, %s1571_s14, [#allocation9]  }
  0x3d   : > { %s1268_s19 = scalar_lea.hbm %s1900_s2, 128 }
  0x3e   : > { %p1269_p11 = scmp.ne.s32.totalorder %s1900_s2, %s1268_s19  ;;  %p1275_p0 = scmp.lt.u32.totalorder %s1268_s19, %s1900_s2 }
  0x40   : > { %p1271_p12 = pnand %p1269_p11, %p1583_p8 }
  0x42   : > { %p1272_p13 = pneg %p1271_p12 }
  0x44   : > { %p1277_p2 = pnand %p1275_p0, %p1272_p13 }
  0x46   : > { %1280 = shalt.err (!%p1277_p2)
}
  0x47   : > { %s1281_s14 = scalar_lea.vmem %s1573_s17, 128  ;;  %p1289_p4 = scmp.lt.s32.totalorder %s1573_s17, %s1573_s17 }
  0x48   : > { %p1282_p5 = scmp.ne.s32.totalorder %s1573_s17, %s1281_s14  ;;  %p1290_p10 = scmp.lt.s32.totalorder %s1281_s14, %s1281_s14 }
  0x4a   : > { %p1284_p7 = pnand %p1282_p5, %p1583_p8  ;;  %p1291_p11 = por %p1290_p10, %p1289_p4 }
  0x4c   : > { %p1285_p9 = pneg %p1284_p7 }
  0x4e   : > { %p1292_p12 = pnand %p1291_p11, %p1285_p9 }
  0x50   : > { %1295 = shalt.err (!%p1292_p12)
}
  0x51   : > { %1117 = dma.hbm_to_vmem [thread:$0]  (!%p1567_p6), %s1900_s2, 128, %s1573_s17, [#allocation6]  }
  0x52   : > { %s1467_s10 = smov [#allocation10]   ;;  %s1468_s13 = smov [#allocation11]  }
  0x53   : > { %s279_s9 = sshll.u32 %s1467_s10, 4  ;;  %s290_s16 = sshll.u32 %s1468_s13, 4  ;;  %s280_s9 = int_to_ptr.vmem [resolvable:$true] %s279_s9  ;;  %s291_s16 = int_to_ptr.vmem [resolvable:$true] %s290_s16 }
  0x54   : > { %s1296_s20 = scalar_lea.hbm %s1902_s4, 128 }
  0x55   : > { %p1297_p13 = scmp.ne.s32.totalorder %s1902_s4, %s1296_s20  ;;  %p1303_p5 = scmp.lt.u32.totalorder %s1296_s20, %s1902_s4 }
  0x57   : > { %p1299_p0 = pnand %p1297_p13, %p1583_p8 }
  0x59   : > { %p1300_p2 = pneg %p1299_p0 }
  0x5b   : > { %p1305_p7 = pnand %p1303_p5, %p1300_p2 }
  0x5d   : > { %1308 = shalt.err (!%p1305_p7)
}
  0x5e   : > { %s1309_s17 = scalar_lea.vmem %s280_s9, 128  ;;  %p1317_p11 = scmp.lt.s32.totalorder %s280_s9, %s280_s9 }
  0x5f   : > { %p1310_p9 = scmp.ne.s32.totalorder %s280_s9, %s1309_s17  ;;  %p1318_p12 = scmp.lt.s32.totalorder %s1309_s17, %s1309_s17 }
  0x61   : > { %p1312_p4 = pnand %p1310_p9, %p1583_p8  ;;  %p1319_p1 = por %p1318_p12, %p1317_p11 }
  0x63   : > { %p1313_p10 = pneg %p1312_p4 }
  0x65   : > { %p1320_p3 = pnand %p1319_p1, %p1313_p10 }
  0x67   : > { %1323 = shalt.err (!%p1320_p3)
}
  0x68   : > { %1123 = dma.hbm_to_vmem [thread:$0]  (!%p1567_p6), %s1902_s4, 128, %s280_s9, [#allocation9]  }
  0x69   : > { %s1324_s18 = scalar_lea.hbm %s1903_s5, 128 }
  0x6a   : > { %p1325_p13 = scmp.ne.s32.totalorder %s1903_s5, %s1324_s18  ;;  %p1331_p3 = scmp.lt.u32.totalorder %s1324_s18, %s1903_s5 }
  0x6c   : > { %p1327_p0 = pnand %p1325_p13, %p1583_p8 }
  0x6e   : > { %p1328_p1 = pneg %p1327_p0 }
  0x70   : > { %p1333_p2 = pnand %p1331_p3, %p1328_p1 }
  0x72   : > { %1336 = shalt.err (!%p1333_p2)
}
  0x73   : > { %s1337_s24 = scalar_lea.vmem %s291_s16, 128  ;;  %p1345_p4 = scmp.lt.s32.totalorder %s291_s16, %s291_s16 }
  0x74   : > { %p1338_p5 = scmp.ne.s32.totalorder %s291_s16, %s1337_s24  ;;  %p1346_p10 = scmp.lt.s32.totalorder %s1337_s24, %s1337_s24 }
  0x76   : > { %p1340_p7 = pnand %p1338_p5, %p1583_p8  ;;  %p1347_p11 = por %p1346_p10, %p1345_p4 }
  0x78   : > { %p1341_p9 = pneg %p1340_p7 }
  0x7a   : > { %p1348_p12 = pnand %p1347_p11, %p1341_p9 }
  0x7c   : > { %1351 = shalt.err (!%p1348_p12)
}
  0x7d   : > { %1126 = dma.hbm_to_vmem [thread:$0]  (!%p1567_p6), %s1903_s5, 128, %s291_s16, [#allocation12]  }
  0x7e   : > { %s994_s23 = sadd.s32 4294967294, %s1460_s30   ;;  %s1688_s15 = sadd.s32 1, %s1460_s30  }
  0x7f   : > { %s34_s17 = sadd.s32 1, %s1456_s29  ;;  %s31_s25 = ssub.s32 %s1460_s30, %s1688_s15 }
  0x80   : > { %p41_p8 = scmp.ne.s32.totalorder %s1456_s29, %s1452_s28  ;;  %p32_p13 = scmp.eq.s32.totalorder %s31_s25, 0 }
  0x81   : > { %p42_p0 = scmp.eq.s32.totalorder %s1460_s30, 0  ;;  %p47_p1 = scmp.ne.s32.totalorder %s1452_s28, %s1448_s27 }
  0x82   : > { %p218_p3 = scmp.eq.s32.totalorder %s1551_s11, 1  ;;  %p1913_p5 = scmp.eq.s32.totalorder %s1551_s11, 0 }
  0x83   : > { %s1700_s26 = scalar_select %p32_p13, %s1456_s29, %s34_s17  }
  0x84   : > { %p43_p2 = por %p42_p0, %p41_p8  ;;  %p1704_p7 = por %p1913_p5, %p47_p1 }
  0x85   : > { %p1708_p6 = por %p218_p3, %p41_p8  ;;  %p224_p9 = scmp.eq.s32.totalorder %s994_s23, 1 }
  0x86   : > { %p1140_p4 = scmp.lt.s32.totalorder %s1460_s30, 2  ;;  %s307_s13 = sand.u32 1, %s1456_s29  }
  0x87   : > { %s1915_s16 = scalar_select %p1708_p6, 1, 0 }
  0x88   : > { %p1714_p10 = por %p224_p9, %p47_p1  ;;  %s1002_s19 = sshll.u32 %s307_s13, 3 }
  0x89   : > { %s1003_s20 = sshll.u32 %s1460_s30, 7  ;;  %s311_s9 = scalar_lea.vmem [#allocation2], %s1002_s19 }
  0x8a   : > { %s1916_s18 = scalar_select %p1714_p10, 1, 0 }
  0x8b   : > { %s1722_s24 = scalar_lea.hbm %s1898_s0, %s1003_s20  ;;  %s318_s14 = sshll.u32 %s311_s9, 4  ;;  %s1728_s14 = int_to_ptr.vmem [resolvable:$true] %s318_s14 }
  0x8c   : > { %p1724_p11 = pnand %p1140_p4, %p43_p2  ;;  %s308_s17 = scalar_lea.sflag [#allocation3], %s307_s13 }
  0x8d   : > { %s1352_s25 = scalar_lea.hbm %s1722_s24, 128  ;;  %s1357_s21 = scalar_lea.hbm %s1898_s0, 256 }
  0x8e   : > { %p1353_p12 = scmp.ne.s32.totalorder %s1722_s24, %s1352_s25  ;;  %p1354_p8 = pneg %p1724_p11 }
  0x8f   : > { %p1358_p1 = scmp.lt.u32.totalorder %s1722_s24, %s1898_s0  ;;  %p1359_p3 = scmp.lt.u32.totalorder %s1357_s21, %s1352_s25 }
  0x90   : > { %p1355_p13 = pnand %p1354_p8, %p1353_p12  ;;  %p1361_p5 = scmp.lt.u32.totalorder %s1352_s25, %s1722_s24 }
  0x91   : > { %p1360_p2 = por %p1359_p3, %p1358_p1 }
  0x92   : > { %p1356_p0 = pneg %p1355_p13 }
  0x93   : > { %p1362_p9 = por %p1361_p5, %p1360_p2 }
  0x95   : > { %p1363_p4 = pnand %p1362_p9, %p1356_p0 }
  0x97   : > { %1366 = shalt.err (!%p1363_p4)
}
  0x98   : > { %s1367_s13 = scalar_lea.vmem %s1728_s14, 128  ;;  %s1469_s20 = smov [#allocation2]  }
  0x99   : > { %p1368_p12 = scmp.ne.s32.totalorder %s1728_s14, %s1367_s13  ;;  %s1372_s19 = sshll.u32 %s1469_s20, 4  ;;  %s1373_s19 = int_to_ptr.vmem [resolvable:$false] %s1372_s19 }
  0x9a   : > { %s1374_s22 = scalar_lea.vmem %s1373_s19, 256  ;;  %p1375_p6 = scmp.lt.s32.totalorder %s1728_s14, %s1373_s19 }
  0x9b   : > { %p1370_p13 = pnand %p1368_p12, %p1354_p8  ;;  %p1376_p1 = scmp.lt.s32.totalorder %s1374_s22, %s1367_s13 }
  0x9d   : > { %p1371_p10 = pneg %p1370_p13  ;;  %p1377_p3 = por %p1376_p1, %p1375_p6 }
  0x9f   : > { %p1378_p2 = pnand %p1377_p3, %p1371_p10 }
  0xa1   : > { %1381 = shalt.err (!%p1378_p2)
}
  0xa2   : > { %1130 = dma.hbm_to_vmem [thread:$0]  (!%p1724_p11), %s1722_s24, 128, %s1728_s14, %s308_s17  }
  0xa3   : > { %p1918_p0 = scmp.ne.s32.totalorder %s1910_s12, 0 }
  0xa4   : > { %s1758_s25 = sand.u32 (!%p1918_p0), 1, %s1452_s28  }
  0xa5   : > { %327 = sbr.rel (%p1918_p0) target bundleno = 1599 (0x63f), region = 52  ;;  %s1005_s21 = sshll.u32 (!%p1918_p0), %s1758_s25, 3 }
  0xa6   : > { %s330_s9 = scalar_lea.sflag (!%p1918_p0), [#allocation3], %s1758_s25  ;;  %s333_s13 = scalar_lea.vmem (!%p1918_p0), [#allocation2], %s1005_s21 }
  0xac   : > { %1427 = dma.done.wait (%p1704_p7), %s330_s9, 128  }
  0xad   : > { %1429 = vsyncadd (%p1704_p7), %s330_s9, 4294967168  ;;  %p1919_p6 = scmp.eq.s32.totalorder %s1551_s11, 0 }
  0xaf   : > { %1431 = dma.done.wait (%p1919_p6), [#allocation6], 384   ;;  %p1920_p10 = pmov %p1919_p6 }
  0xb0   : > { %p1921_p11 = pmov %p1919_p6 }
  0xb1   : > { %1433 = vsyncadd (%p1920_p10), [#allocation6], 4294966912 }
  0xb2   : > { %1435 = dma.done.wait (%p1921_p11), [#allocation9], 256   ;;  %p1922_p8 = pmov %p1919_p6 }
  0xb3   : > { %p1923_p5 = pmov %p1919_p6 }
  0xb4   : > { %1437 = vsyncadd (%p1922_p8), [#allocation9], 4294967040 }
  0xb5   : > { %1439 = dma.done.wait (%p1923_p5), [#allocation12], 128   ;;  %p1924_p9 = pmov %p1923_p5 }
  0xb6   : > { %v1470_v0 = vmov 0.0   ;;  %vm1471_vm0 = vmmov 0   ;;  %v1200_v1 = vld [vmem:[#allocation5] sm:$0xff]   ;;  %v1201_v2 = vld [vmem:[#allocation5 + $0x8] sm:$0xff]   ;;  %v387_v3 = vld [vmem:[%s333_s13] sm:$0xff]  ;;  %vm405_vm1 = vcmask 261120  }
  0xb7   : > { %1441 = vsyncadd (%p1924_p9), [#allocation12], 4294967168  ;;  %1043 = vmatprep.subr.bf16.mxu0 %v1470_v0  ;;  %1047 = vmatprep.mubr.msk.bf16.mxu0 %vm1471_vm0, %v1470_v0  ;;  %v388_v4 = vpack.c.bf16 %v387_v3, %v387_v3  ;;  %v449_v5 = vld [vmem:[#allocation7] sm:$0xff]  ;;  %s1472_s12 = smov 72   ;;  %s1473_s10 = smov 88   ;;  %v451_v12 = vld [vmem:[#allocation10] sm:$0xff] }
  0xb8   : > { %1051 = vmatprep.subr.bf16.mxu1 %v1470_v0  ;;  %1053 = vmatprep.mubr.msk.bf16.mxu1 %vm1471_vm0, %v1470_v0  ;;  %s1474_s24 = smov 104   ;;  %s1475_s14 = smov 120   ;;  %vm463_vm2 = vcmask 64512   ;;  %v452_v15 = vld [vmem:[#allocation11] sm:$0xff]  ;;  %v450_v24 = vld [vmem:[#allocation8] sm:$0xff]  ;;  %vm491_vm3 = vcmask 130048  }
  0xb9   : > { %1044 = vmatpush3.bf16.msra.mxu0 %v1200_v1  ;;  %s1476_s23 = smov 32   ;;  %s1477_s17 = smov 48   ;;  %vm554_vm4 = vcmask 1043456  }
  0xba   : > { %1045 = vmatprep.subr.bf16.mxu0 %v1470_v0  ;;  %s1478_s20 = smov 16   ;;  %s1479_s19 = smov 96  }
  0xbb   : > { %s1480_s22 = smov 8   ;;  %s1481_s9 = smov 80  }
  0xbc   : > { %s1482_s13 = smov 112   ;;  %p1925_p4 = scmp.ne.s32.totalorder %s1915_s16, 0 }
  0xbd   : > { %1046 = vmatpush3.bf16.msra.mxu0 %v1201_v2 }
  0xbe   : > { %1057 = vmatprep.subr.bf16.mxu0 %v1470_v0 }
  0xc0   : > { %1048 = vmatmul.mubr.msk.bf16.vlgmr.msra.gmra.mrb[0].mxu0 %vm405_vm1, %v388_v4 }
  0xc1   : > { %1059 = vmatprep.mubr.msk.bf16.mxu0 %vm1471_vm0, %v1470_v0 }
 0x193   : > { %v1791_v6 = vpop.f32.mrb[0].mxu0 }
 0x194   : > { %v1049_v7 = vpop.f32.mrb[1].mxu0  ;;  %v454_v8 = vsub.f32 0.0, %v1791_v6  ;;  %v1795_v9 = vmul.f32 %v449_v5, %v1791_v6  ;;  %v487_v63 = vpack.c.bf16 %v1791_v6, %v1791_v6 }
 0x195   : > { %v446_v10 = vpop.f32.mrb[2].mxu0 }
 0x196   : > { %626 = vrot.lane.b32.xlu1 %v454_v8, %s1472_s12  ;;  %473 = vrot.lane.b32.xlu0 %v454_v8, %s1473_s10  ;;  %v1050_v11 = vpop.f32.mrb[3].mxu0  ;;  %s1483_s12 = smov 64  }
 0x19a   : > { %629 = vrot.lane.b32.xlu1 %v1791_v6, %s1473_s10  ;;  %476 = vrot.lane.b32.xlu0 %v1791_v6, %s1474_s24 }
 0x19e   : > { %611 = vrot.lane.b32.xlu1 %v1791_v6, %s1475_s14  ;;  %608 = vrot.lane.b32.xlu0 %v454_v8, %s1474_s24  ;;  %s1484_s24 = smov [#allocation13]  }
 0x1a2   : > { %469 = vrot.lane.b32.xlu0 %v451_v12, %s1476_s23 }
 0x1a6   : > { %622 = vrot.lane.b32.xlu0 %v451_v12, %s1477_s17 }
 0x1aa   : > { %604 = vrot.lane.b32.xlu0 %v449_v5, %s1478_s20 }
 0x208   : > { %v627_v13 = vpop.permute.xlu1 %626  ;;  %v474_v14 = vpop.permute.xlu0 %473 }
 0x20c   : > { %v630_v16 = vpop.permute.xlu1 %629  ;;  %v477_v17 = vpop.permute.xlu0 %476 }
 0x20d   : > { %v479_v18 = vsel %vm463_vm2, %v474_v14, %v477_v17  ;;  %v632_v20 = vsel %vm463_vm2, %v627_v13, %v630_v16  ;;  %v1202_v17 = vld [vmem:[%s1904_s6] sm:$0xff]  }
 0x20e   : > { %v480_v19 = vmul.f32 %v479_v18, %v452_v15  ;;  %v633_v23 = vmul.f32 %v632_v20, %v452_v15  ;;  %v1203_v18 = vld [vmem:[%s1904_s6 + $0x8] sm:$0xff]  }
 0x210   : > { %v612_v21 = vpop.permute.xlu1 %611  ;;  %482 = vrot.lane.b32.xlu1 %v480_v19, %s1476_s23  ;;  %v609_v22 = vpop.permute.xlu0 %608 }
 0x211   : > { %v614_v25 = vsel %vm463_vm2, %v609_v22, %v612_v21 }
 0x212   : > { %v615_v26 = vmul.f32 %v614_v25, %v450_v24 }
 0x214   : > { %635 = vrot.lane.b32.xlu1 %v633_v23, %s1477_s17  ;;  %v470_v27 = vpop.permute.xlu0 %469 }
 0x215   : > { %v472_v29 = vmul.f32 %v470_v27, %v1791_v6 }
 0x218   : > { %617 = vrot.lane.b32.xlu1 %v615_v26, %s1478_s20  ;;  %v623_v28 = vpop.permute.xlu0 %622 }
 0x219   : > { %v625_v32 = vmul.f32 %v623_v28, %v1791_v6 }
 0x21c   : > { %456 = vrot.lane.b32.xlu1 %v454_v8, %s1475_s14  ;;  %v605_v34 = vpop.permute.xlu0 %604  ;;  %s1386_s14 = sshll.u32 %s1484_s24, 4  ;;  %s1387_s14 = int_to_ptr.vmem [resolvable:$false] %s1386_s14 }
 0x21d   : > { %v607_v37 = vmul.f32 %v605_v34, %v1791_v6  ;;  %s1388_s23 = scalar_lea.vmem %s1387_s14, 256 }
 0x282   : > { %v483_v30 = vpop.permute.xlu1 %482 }
 0x283   : > { %v485_v31 = vadd.f32 %v483_v30, %v472_v29 }
 0x285   : > { %v486_v33 = vpack.c.bf16 %v485_v31, %v485_v31 }
 0x286   : > { %v636_v35 = vpop.permute.xlu1 %635 }
 0x287   : > { %v638_v36 = vadd.f32 %v636_v35, %v625_v32  ;;  %489 = vrot.lane.b32.xlu0 %v486_v33, %s1479_s19  ;;  %s1025_s19 = sshll.u32 %s1551_s11, 7  ;;  %s863_s11 = scalar_lea.sflag [#allocation4], %s1758_s25 }
 0x288   : > { %s1853_s10 = scalar_lea.hbm %s1906_s8, %s1025_s19 }
 0x289   : > { %v639_v38 = vpack.c.bf16 %v638_v36, %v638_v36 }
 0x28a   : > { %v618_v39 = vpop.permute.xlu1 %617 }
 0x28b   : > { %v620_v40 = vadd.f32 %v618_v39, %v607_v37  ;;  %460 = vrot.lane.b32.xlu0 %v1791_v6, %s1480_s22  ;;  %644 = vrot.lane.b32.xlu1 %v639_v38, %s1481_s9  ;;  %v1023_v39 = vld [vmem:[%s1905_s7] ss:$0 sm:$0xff]  ;;  %s385_s22 = scalar_lea.vmem [#allocation13], %s1005_s21 }
 0x28c   : > { %s876_s9 = sshll.u32 %s385_s22, 4  ;;  %s1855_s9 = int_to_ptr.vmem [resolvable:$true] %s876_s9 }
 0x28d   : > { %v621_v41 = vpack.c.bf16 %v620_v40, %v620_v40  ;;  %s1382_s21 = scalar_lea.vmem %s1855_s9, 128  ;;  %p1389_p1 = scmp.lt.s32.totalorder %s1855_s9, %s1387_s14 }
 0x28e   : > { %v457_v44 = vpop.permute.xlu1 %456  ;;  %p1383_p7 = scmp.ne.s32.totalorder %s1855_s9, %s1382_s21  ;;  %p1390_p3 = scmp.lt.s32.totalorder %s1388_s23, %s1382_s21 }
 0x28f   : > { %641 = vrot.lane.b32.xlu0 %v621_v41, %s1482_s13 }
 0x290   : > { %p1384_p12 = pnand %p1383_p7, %p1925_p4  ;;  %p1391_p2 = por %p1390_p3, %p1389_p1 }
 0x292   : > { %p1385_p13 = pneg %p1384_p12 }
 0x294   : > { %p1392_p0 = pnand %p1391_p2, %p1385_p13 }
 0x2f9   : > { %v490_v42 = vpop.permute.xlu0 %489 }
 0x2fa   : > { %v496_v43 = vsel %vm491_vm3, %v490_v42, 0 }
 0x2fb   : > { %1052 = vmatpush3.bf16.xpose.msra.mxu1 %v496_v43 }
 0x2fc   : > { %1063 = vmatprep.subr.bf16.mxu1 %v1470_v0 }
 0x2fd   : > { %v461_v45 = vpop.permute.xlu0 %460  ;;  %v645_v49 = vpop.permute.xlu1 %644 }
 0x2fe   : > { %v464_v46 = vsel %vm463_vm2, %v457_v44, %v461_v45  ;;  %v650_v51 = vsel %vm491_vm3, %v645_v49, 0 }
 0x2ff   : > { %v465_v47 = vmul.f32 %v464_v46, %v450_v24 }
 0x301   : > { %v466_v48 = vadd.f32 %v465_v47, %v1795_v9  ;;  %v642_v52 = vpop.permute.xlu0 %641 }
 0x303   : > { %v467_v50 = vpack.c.bf16 %v466_v48, %v466_v48 }
 0x305   : > { %1054 = vmatmul.mubr.msk.bf16.vlgmr.msra.gmra.mrb[0].mxu1 %vm491_vm3, %v467_v50 }
 0x306   : > { %1064 = vmatpush3.bf16.xpose.msra.mxu1 %v650_v51  ;;  %1065 = vmatprep.mubr.msk.bf16.mxu1 %vm1471_vm0, %v1470_v0 }
 0x307   : > { %1075 = vmatprep.subr.bf16.mxu1 %v1470_v0 }
 0x30d   : > { %1066 = vmatmul.mubr.msk.bf16.vlgmr.msra.gmra.mrb[4].mxu1 %vm491_vm3, %v642_v52 }
 0x30e   : > { %1077 = vmatprep.mubr.msk.bf16.mxu1 %vm1471_vm0, %v1470_v0  ;;  %1076 = vmatpush3.bf16.msra.mxu1 %v1203_v18 }
 0x3d8   : > { %v532_v53 = vpop.f32.mrb[0].mxu1 }
 0x3d9   : > { %v1055_v54 = vpop.f32.mrb[1].mxu1  ;;  %v538_v55 = vsel %vm463_vm2, %v532_v53, -inf }
 0x3da   : > { %539 = vmax.xlane.f32.xlu1 %v538_v55  ;;  %v535_v56 = vpop.f32.mrb[2].mxu1 }
 0x3db   : > { %v1056_v57 = vpop.f32.mrb[3].mxu1 }
 0x3e0   : > { %v686_v58 = vpop.f32.mrb[4].mxu1 }
 0x3e1   : > { %v1067_v59 = vpop.f32.mrb[5].mxu1  ;;  %v692_v60 = vsel %vm463_vm2, %v686_v58, -inf }
 0x3e2   : > { %693 = vmax.xlane.f32.xlu0 %v692_v60  ;;  %v689_v61 = vpop.f32.mrb[6].mxu1 }
 0x3e3   : > { %v1068_v62 = vpop.f32.mrb[7].mxu1 }
 0x3eb   : > { %702 = vrot.lane.b32.xlu1 %v487_v63, %s1477_s17 }
 0x3f8   : > { %549 = vrot.lane.b32.xlu0 %v487_v63, %s1483_s12 }
 0x467   : > { %v540_v1 = vpop.xlane.xlu1 %539 }
 0x468   : > { %v541_v2 = vsub.f32 %v532_v53, %v540_v1 }
 0x46a   : > { %v542_v3 = vmul.f32 1.442695, %v541_v2 }
 0x46b   : > { %v703_v11 = vpop.permute.xlu1 %702 }
 0x46c   : > { %1204 = vpow2.f32 %v542_v3  ;;  %v708_v13 = vsel %vm554_vm4, %v703_v11, 0 }
 0x46f   : > { %v694_v4 = vpop.xlane.xlu0 %693 }
 0x470   : > { %v695_v5 = vsub.f32 %v686_v58, %v694_v4 }
 0x472   : > { %v696_v7 = vmul.f32 1.442695, %v695_v5 }
 0x473   : > { %v550_v8 = vpop.permute.xlu0 %549 }
 0x474   : > { %1206 = vpow2.f32 %v696_v7  ;;  %v556_v9 = vsel %vm554_vm4, %v550_v8, 0 }
 0x475   : > { %1058 = vmatpush3.bf16.msra.mxu0 %v556_v9 }
 0x476   : > { %v1205_v10 = vpop.eup %1204  ;;  %1069 = vmatprep.subr.bf16.mxu0 %v1470_v0 }
 0x477   : > { %v544_v6 = vsel %vm463_vm2, %v1205_v10, 0.0  ;;  %v547_v12 = vpack.c.bf16 %v1205_v10, %v1205_v10 }
 0x478   : > { %545 = vadd.xlane.f32.xlu1 %v544_v6 }
 0x479   : > { %1060 = vmatmul.mubr.msk.bf16.vlgmr.msra.gmra.mrb[4].mxu0 %vm463_vm2, %v547_v12 }
 0x47a   : > { %1070 = vmatpush3.bf16.msra.mxu0 %v708_v13  ;;  %1071 = vmatprep.mubr.msk.bf16.mxu0 %vm1471_vm0, %v1470_v0 }
 0x47b   : > { %1081 = vmatprep.subr.bf16.mxu0 %v1470_v0 }
 0x47e   : > { %v1207_v14 = vpop.eup %1206 }
 0x47f   : > { %v698_v15 = vsel %vm463_vm2, %v1207_v14, 0.0  ;;  %v701_v16 = vpack.c.bf16 %v1207_v14, %v1207_v14 }
 0x480   : > { %699 = vadd.xlane.f32.xlu0 %v698_v15 }
 0x481   : > { %1072 = vmatmul.mubr.msk.bf16.vlgmr.msra.gmra.mrb[8].mxu0 %vm463_vm2, %v701_v16 }
 0x482   : > { %1083 = vmatprep.mubr.msk.bf16.mxu0 %vm1471_vm0, %v1470_v0  ;;  %1082 = vmatpush3.bf16.msra.mxu0 %v1202_v17 }
 0x505   : > { %v546_v19 = vpop.xlane.xlu1 %545 }
 0x506   : > { %1208 = vrcp.f32 %v546_v19 }
 0x50d   : > { %v700_v20 = vpop.xlane.xlu0 %699 }
 0x50e   : > { %1210 = vrcp.f32 %v700_v20 }
 0x510   : > { %v1209_v21 = vpop.eup %1208 }
 0x518   : > { %v1211_v27 = vpop.eup %1210 }
 0x54c   : > { %v592_v22 = vpop.f32.mrb[4].mxu0 }
 0x54d   : > { %v599_v23 = vmul.f32 %v1209_v21, %v592_v22  ;;  %v1061_v24 = vpop.f32.mrb[5].mxu0 }
 0x54e   : > { %v595_v25 = vpop.f32.mrb[6].mxu0 }
 0x54f   : > { %v600_v0 = vpack.c.bf16 %v599_v23, %v599_v23  ;;  %v1062_v26 = vpop.f32.mrb[7].mxu0 }
 0x551   : > { %1084 = vmatmul.mubr.msk.bf16.vlgmr.msra.gmra.mrb[12].mxu0 %vm491_vm3, %v600_v0 }
 0x554   : > { %v744_v28 = vpop.f32.mrb[8].mxu0 }
 0x555   : > { %v751_v29 = vmul.f32 %v1211_v27, %v744_v28  ;;  %v1073_v30 = vpop.f32.mrb[9].mxu0 }
 0x556   : > { %v747_v31 = vpop.f32.mrb[10].mxu0 }
 0x557   : > { %v752_v32 = vpack.c.bf16 %v751_v29, %v751_v29  ;;  %v1074_v33 = vpop.f32.mrb[11].mxu0 }
 0x559   : > { %1078 = vmatmul.mubr.msk.bf16.vlgmr.msra.gmra.mrb[8].mxu1 %vm491_vm3, %v752_v32 }
 0x624   : > { %v847_v34 = vpop.f32.mrb[12].mxu0 }
 0x625   : > { %v1085_v35 = vpop.f32.mrb[13].mxu0 }
 0x626   : > { %v850_v36 = vpop.f32.mrb[14].mxu0 }
 0x627   : > { %v1086_v37 = vpop.f32.mrb[15].mxu0 }
 0x62c   : > { %v798_v38 = vpop.f32.mrb[8].mxu1 }
 0x62d   : > { %v848_v40 = vadd.f32 %v847_v34, %v798_v38  ;;  %v1079_v41 = vpop.f32.mrb[9].mxu1 }
 0x62e   : > { %v801_v42 = vpop.f32.mrb[10].mxu1 }
 0x62f   : > { %v860_v43 = vadd.f32 %v1023_v39, %v848_v40  ;;  %v1080_v44 = vpop.f32.mrb[11].mxu1 }
 0x631   : > { %861 = vst.msk [vmem:[%s385_s22] sm:$0xff] %vm405_vm1, %v860_v43 }
 0x632   : > { %1395 = shalt.err (!%p1392_p0)
}
 0x633   : > { %s1396_s25 = scalar_lea.hbm %s1853_s10, 128  ;;  %s1400_s19 = scalar_lea.hbm %s1906_s8, 256 }
 0x634   : > { %p1397_p6 = scmp.ne.s32.totalorder %s1853_s10, %s1396_s25  ;;  %p1401_p8 = scmp.lt.u32.totalorder %s1853_s10, %s1906_s8 }
 0x635   : > { %p1402_p5 = scmp.lt.u32.totalorder %s1400_s19, %s1396_s25  ;;  %p1404_p7 = scmp.lt.u32.totalorder %s1396_s25, %s1853_s10 }
 0x636   : > { %p1398_p10 = pnand %p1397_p6, %p1925_p4 }
 0x637   : > { %p1403_p9 = por %p1402_p5, %p1401_p8 }
 0x638   : > { %p1399_p11 = pneg %p1398_p10 }
 0x639   : > { %p1405_p12 = por %p1404_p7, %p1403_p9 }
 0x63b   : > { %p1406_p13 = pnand %p1405_p12, %p1399_p11 }
 0x63d   : > { %1409 = shalt.err (!%p1406_p13)
}
 0x63e   : > { %1109 = dma.vmem_to_hbm [thread:$0]  (%p1925_p4), %s1855_s9, 128, %s1853_s10, %s863_s11  }
 0x63f PF: > { %s888_s12 = sand.u32 1, %s1448_s27   ;;  %p1926_p1 = scmp.ne.s32.totalorder %s1916_s18, 0 }
 0x640   : > { %p1927_p3 = scmp.ge.s32.totalorder %s1460_s30, 2  ;;  %s889_s21 = scalar_lea.sflag [#allocation4], %s888_s12 }
 0x642   : > { %p1132_p2 = pnand %p1927_p3, %p1926_p1 }
 0x644   : > { %1443 = dma.done.wait (!%p1132_p2), %s889_s21, 128  }
 0x645   : > { %1445 = vsyncadd (!%p1132_p2), %s889_s21, 4294967168  ;;  %p24_p0 = scmp.ge.s32.totalorder %s1688_s15, 4   ;;  %s1928_s27 = smov %s1452_s28 }
 0x646   : > { %s1929_s28 = smov %s1456_s29  ;;  %s1930_s29 = smov %s1700_s26 }
 0x647   : > { %s1931_s30 = smov %s1688_s15  ;;  %26 = sbr.rel (!%p24_p0) target bundleno = 8 (0x8), region = 117 }
 0x64e   :  { %894 = vsyncpa [#allocation3], 1 }
 0x64f   :  { %896 = vsyncpa [#allocation3 + $0x1], 1 }
 0x650   :  { %897 = vsyncpa [#allocation6], 1 }
 0x651   :  { %898 = vsyncpa [#allocation9], 1 }
 0x652   :  { %899 = vsyncpa [#allocation12], 1 }
 0x653   :  { %900 = vsyncpa [#allocation4], 1 }
 0x654   :  { %902 = vsyncpa [#allocation4 + $0x1], 1 }

</bundles_post_ra>
